<compile_context>
chip_gen: v5e
topology: v5e:2x2
jax: 0.10.0
libtpu: 0.0.40
codegen_flags: <defaults>
</compile_context>

<pallas_src>
import jax
import jax.numpy as jnp
from jax.experimental import pallas as pl
from jax.experimental.pallas import tpu as pltpu


# ---- packed-parameter layout (flat f32, 66 elements) -----------------------
# W1 (5x5, row-major [out, in]) : offsets  0..24
# b1 (5,)                       : offsets 25..29
# W2 (5x5)                      : offsets 30..54
# b2 (5,)                       : offsets 55..59
# W3 (1x5)                      : offsets 60..64
# b3 (1,)                       : offset  65
_W1_OFF, _B1_OFF = 0, 25
_W2_OFF, _B2_OFF = 30, 55
_W3_OFF, _B3_OFF = 60, 65
_N_PARAMS = 66


def mlp_kernel(w_ref, x_ref, o_ref):
    """w_ref: SMEM f32[66] (scalar-prefetched packed params)
       x_ref: VMEM f32[5, TB]   (features x batch-tile, lane-dense in batch)
       o_ref: VMEM f32[1, TB]   (lane-dense output slab)
    """

    def sigmoid(z):
        # exact logistic; exp lands on the EUP slot, add/div on the VPU.
        return 1.0 / (1.0 + jnp.exp(-z))

    def dense_sigmoid(rows_in, n_in, n_out, w_off, b_off):
        # rows_in: list of (1, TB) vectors. Unrolled scalar*vector MACs on the
        # VPU -- no MXU push/pop for a K=5 contraction.
        outs = []
        for i in range(n_out):
            acc = rows_in[0] * w_ref[w_off + n_in * i + 0]
            for k in range(1, n_in):
                acc = acc + rows_in[k] * w_ref[w_off + n_in * i + k]
            acc = acc + w_ref[b_off + i]
            outs.append(sigmoid(acc))
        return outs

    # Load the 5 feature rows of the current batch tile, each (1, TB).
    h = [x_ref[pl.ds(k, 1), :] for k in range(5)]

    h = dense_sigmoid(h, 5, 5, _W1_OFF, _B1_OFF)   # Linear(5,5) + Sigmoid
    h = dense_sigmoid(h, 5, 5, _W2_OFF, _B2_OFF)   # Linear(5,5) + Sigmoid
    h = dense_sigmoid(h, 5, 1, _W3_OFF, _B3_OFF)   # Linear(5,1) + Sigmoid

    o_ref[...] = h[0]                               # (1, TB), unmasked lane-dense store


def pack_params(params):
    """Pack (w1,b1,w2,b2,w3,b3) -- weights stored (out, in) -- into one flat f32."""
    w1, b1, w2, b2, w3, b3 = params
    flat = jnp.concatenate([
        w1.reshape(-1), b1.reshape(-1),
        w2.reshape(-1), b2.reshape(-1),
        w3.reshape(-1), b3.reshape(-1),
    ]).astype(jnp.float32)
    assert flat.shape[0] == _N_PARAMS
    return flat


def net_forward(x, params):
    """x: (B, 5) float32 -> (B, 1) float32 (same semantics as the torch module)."""
    B, F = x.shape
    assert F == 5

    w_flat = pack_params(params)

    # Re-layout: batch onto the lane axis. Pad batch to a multiple of the tile.
    # Tile sizing: 128 lanes for tiny batches; 512 for large batches (reaches
    # ~85% of HBM roofline on v6e; VMEM footprint per tile is only ~12 KiB, so
    # it is comfortably within v7x's 64 MiB VMEM as well).
    TB = 512 if B >= 512 else 128
    B_pad = ((B + TB - 1) // TB) * TB
    num_tiles = B_pad // TB

    xt = x.astype(jnp.float32).T                     # (5, B)
    if B_pad != B:
        xt = jnp.pad(xt, ((0, 0), (0, B_pad - B)))   # (5, B_pad)

    out = pl.pallas_call(
        mlp_kernel,
        out_shape=jax.ShapeDtypeStruct((1, B_pad), jnp.float32),
        grid_spec=pltpu.PrefetchScalarGridSpec(
            num_scalar_prefetch=1,                   # packed params -> SMEM
            grid=(num_tiles,),
            in_specs=[pl.BlockSpec((5, TB), lambda i, w: (0, i))],
            out_specs=pl.BlockSpec((1, TB), lambda i, w: (0, i)),
        ),
        compiler_params=pltpu.CompilerParams(
            dimension_semantics=("parallel",),       # shard batch tiles across TCs
            vmem_limit_bytes=32 * 1024 * 1024,       # explicit; tiny actual usage
        ),
    )(w_flat, xt)

    return out[:, :B].T                              # back to (B, 1)


def init_params(key):
    """Mirror torch.nn.Linear init: U(-1/sqrt(fan_in), +1/sqrt(fan_in)),
    weights stored (out_features, in_features)."""
    def linear(key, fan_in, fan_out):
        k_w, k_b = jax.random.split(key)
        bound = 1.0 / jnp.sqrt(float(fan_in))
        w = jax.random.uniform(k_w, (fan_out, fan_in), jnp.float32, -bound, bound)
        b = jax.random.uniform(k_b, (fan_out,), jnp.float32, -bound, bound)
        return w, b

    k1, k2, k3 = jax.random.split(key, 3)
    w1, b1 = linear(k1, 5, 5)
    w2, b2 = linear(k2, 5, 5)
    w3, b3 = linear(k3, 5, 1)
    return (w1, b1, w2, b2, w3, b3)


def reference_forward(x, params):
    """Pure-JAX reference (same math as torch: x @ W.T + b, logistic sigmoid)."""
    w1, b1, w2, b2, w3, b3 = params
    sig = lambda z: 1.0 / (1.0 + jnp.exp(-z))
    h = sig(x @ w1.T + b1)
    h = sig(h @ w2.T + b2)
    return sig(h @ w3.T + b3)


if __name__ == "__main__":
    key = jax.random.PRNGKey(0)
    k_params, k_x = jax.random.split(key)

    params = init_params(k_params)
    x = jax.random.normal(k_x, (8, 5), jnp.float32)   # batch=8, in_features=5

    out = net_forward(x, params)
    jax.block_until_ready(out)

    ref = reference_forward(x, params)
    assert out.shape == (8, 1), out.shape
    assert jnp.allclose(out, ref, atol=1e-5, rtol=1e-5), "mismatch vs reference"

    print("KERNEL_OK")
</pallas_src>

<mosaic_0001>
module attributes {stable_mosaic.version = 11 : i64} {
  func.func @mlp_kernel(%arg0: i32, %arg1: memref<66xf32, #tpu.memory_space<smem>>, %arg2: memref<5x128xf32, #tpu.memory_space<vmem>>, %arg3: memref<1x128xf32, #tpu.memory_space<vmem>>) attributes {dimension_semantics = [#tpu.dimension_semantics<parallel>], iteration_bounds = array<i64: 1>, scalar_prefetch = 1 : i64, scratch_operands = 0 : i64, tpu.core_type = #tpu.core_type<tc>, window_params = [{transform_indices = @transform_0, window_bounds = array<i64: 5, 128>}, {transform_indices = @transform_1, window_bounds = array<i64: 1, 128>}]} {
    %c0 = arith.constant 0 : index
    %c0_0 = arith.constant 0 : index
    %0 = vector.load %arg2[%c0, %c0_0] : memref<5x128xf32, #tpu.memory_space<vmem>>, vector<1x128xf32>
    %c1 = arith.constant 1 : index
    %c0_1 = arith.constant 0 : index
    %1 = vector.load %arg2[%c1, %c0_1] : memref<5x128xf32, #tpu.memory_space<vmem>>, vector<1x128xf32>
    %c2 = arith.constant 2 : index
    %c0_2 = arith.constant 0 : index
    %2 = vector.load %arg2[%c2, %c0_2] : memref<5x128xf32, #tpu.memory_space<vmem>>, vector<1x128xf32>
    %c3 = arith.constant 3 : index
    %c0_3 = arith.constant 0 : index
    %3 = vector.load %arg2[%c3, %c0_3] : memref<5x128xf32, #tpu.memory_space<vmem>>, vector<1x128xf32>
    %c4 = arith.constant 4 : index
    %c0_4 = arith.constant 0 : index
    %4 = vector.load %arg2[%c4, %c0_4] : memref<5x128xf32, #tpu.memory_space<vmem>>, vector<1x128xf32>
    %c0_5 = arith.constant 0 : index
    %5 = memref.load %arg1[%c0_5] : memref<66xf32, #tpu.memory_space<smem>>
    %6 = vector.broadcast %5 : f32 to vector<1x128xf32>
    %7 = arith.mulf %0, %6 : vector<1x128xf32>
    %c1_6 = arith.constant 1 : index
    %8 = memref.load %arg1[%c1_6] : memref<66xf32, #tpu.memory_space<smem>>
    %9 = vector.broadcast %8 : f32 to vector<1x128xf32>
    %10 = arith.mulf %1, %9 : vector<1x128xf32>
    %11 = arith.addf %7, %10 : vector<1x128xf32>
    %c2_7 = arith.constant 2 : index
    %12 = memref.load %arg1[%c2_7] : memref<66xf32, #tpu.memory_space<smem>>
    %13 = vector.broadcast %12 : f32 to vector<1x128xf32>
    %14 = arith.mulf %2, %13 : vector<1x128xf32>
    %15 = arith.addf %11, %14 : vector<1x128xf32>
    %c3_8 = arith.constant 3 : index
    %16 = memref.load %arg1[%c3_8] : memref<66xf32, #tpu.memory_space<smem>>
    %17 = vector.broadcast %16 : f32 to vector<1x128xf32>
    %18 = arith.mulf %3, %17 : vector<1x128xf32>
    %19 = arith.addf %15, %18 : vector<1x128xf32>
    %c4_9 = arith.constant 4 : index
    %20 = memref.load %arg1[%c4_9] : memref<66xf32, #tpu.memory_space<smem>>
    %21 = vector.broadcast %20 : f32 to vector<1x128xf32>
    %22 = arith.mulf %4, %21 : vector<1x128xf32>
    %23 = arith.addf %19, %22 : vector<1x128xf32>
    %c25 = arith.constant 25 : index
    %24 = memref.load %arg1[%c25] : memref<66xf32, #tpu.memory_space<smem>>
    %25 = vector.broadcast %24 : f32 to vector<1x128xf32>
    %26 = arith.addf %23, %25 : vector<1x128xf32>
    %cst = arith.constant 0.000000e+00 : f32
    %27 = vector.broadcast %cst : f32 to vector<1x128xf32>
    %28 = arith.subf %27, %26 : vector<1x128xf32>
    %29 = math.exp %28 : vector<1x128xf32>
    %cst_10 = arith.constant 1.000000e+00 : f32
    %30 = vector.broadcast %cst_10 : f32 to vector<1x128xf32>
    %31 = arith.addf %30, %29 : vector<1x128xf32>
    %cst_11 = arith.constant 1.000000e+00 : f32
    %32 = vector.broadcast %cst_11 : f32 to vector<1x128xf32>
    %33 = arith.divf %32, %31 : vector<1x128xf32>
    %c5 = arith.constant 5 : index
    %34 = memref.load %arg1[%c5] : memref<66xf32, #tpu.memory_space<smem>>
    %35 = vector.broadcast %34 : f32 to vector<1x128xf32>
    %36 = arith.mulf %0, %35 : vector<1x128xf32>
    %c6 = arith.constant 6 : index
    %37 = memref.load %arg1[%c6] : memref<66xf32, #tpu.memory_space<smem>>
    %38 = vector.broadcast %37 : f32 to vector<1x128xf32>
    %39 = arith.mulf %1, %38 : vector<1x128xf32>
    %40 = arith.addf %36, %39 : vector<1x128xf32>
    %c7 = arith.constant 7 : index
    %41 = memref.load %arg1[%c7] : memref<66xf32, #tpu.memory_space<smem>>
    %42 = vector.broadcast %41 : f32 to vector<1x128xf32>
    %43 = arith.mulf %2, %42 : vector<1x128xf32>
    %44 = arith.addf %40, %43 : vector<1x128xf32>
    %c8 = arith.constant 8 : index
    %45 = memref.load %arg1[%c8] : memref<66xf32, #tpu.memory_space<smem>>
    %46 = vector.broadcast %45 : f32 to vector<1x128xf32>
    %47 = arith.mulf %3, %46 : vector<1x128xf32>
    %48 = arith.addf %44, %47 : vector<1x128xf32>
    %c9 = arith.constant 9 : index
    %49 = memref.load %arg1[%c9] : memref<66xf32, #tpu.memory_space<smem>>
    %50 = vector.broadcast %49 : f32 to vector<1x128xf32>
    %51 = arith.mulf %4, %50 : vector<1x128xf32>
    %52 = arith.addf %48, %51 : vector<1x128xf32>
    %c26 = arith.constant 26 : index
    %53 = memref.load %arg1[%c26] : memref<66xf32, #tpu.memory_space<smem>>
    %54 = vector.broadcast %53 : f32 to vector<1x128xf32>
    %55 = arith.addf %52, %54 : vector<1x128xf32>
    %cst_12 = arith.constant 0.000000e+00 : f32
    %56 = vector.broadcast %cst_12 : f32 to vector<1x128xf32>
    %57 = arith.subf %56, %55 : vector<1x128xf32>
    %58 = math.exp %57 : vector<1x128xf32>
    %cst_13 = arith.constant 1.000000e+00 : f32
    %59 = vector.broadcast %cst_13 : f32 to vector<1x128xf32>
    %60 = arith.addf %59, %58 : vector<1x128xf32>
    %cst_14 = arith.constant 1.000000e+00 : f32
    %61 = vector.broadcast %cst_14 : f32 to vector<1x128xf32>
    %62 = arith.divf %61, %60 : vector<1x128xf32>
    %c10 = arith.constant 10 : index
    %63 = memref.load %arg1[%c10] : memref<66xf32, #tpu.memory_space<smem>>
    %64 = vector.broadcast %63 : f32 to vector<1x128xf32>
    %65 = arith.mulf %0, %64 : vector<1x128xf32>
    %c11 = arith.constant 11 : index
    %66 = memref.load %arg1[%c11] : memref<66xf32, #tpu.memory_space<smem>>
    %67 = vector.broadcast %66 : f32 to vector<1x128xf32>
    %68 = arith.mulf %1, %67 : vector<1x128xf32>
    %69 = arith.addf %65, %68 : vector<1x128xf32>
    %c12 = arith.constant 12 : index
    %70 = memref.load %arg1[%c12] : memref<66xf32, #tpu.memory_space<smem>>
    %71 = vector.broadcast %70 : f32 to vector<1x128xf32>
    %72 = arith.mulf %2, %71 : vector<1x128xf32>
    %73 = arith.addf %69, %72 : vector<1x128xf32>
    %c13 = arith.constant 13 : index
    %74 = memref.load %arg1[%c13] : memref<66xf32, #tpu.memory_space<smem>>
    %75 = vector.broadcast %74 : f32 to vector<1x128xf32>
    %76 = arith.mulf %3, %75 : vector<1x128xf32>
    %77 = arith.addf %73, %76 : vector<1x128xf32>
    %c14 = arith.constant 14 : index
    %78 = memref.load %arg1[%c14] : memref<66xf32, #tpu.memory_space<smem>>
    %79 = vector.broadcast %78 : f32 to vector<1x128xf32>
    %80 = arith.mulf %4, %79 : vector<1x128xf32>
    %81 = arith.addf %77, %80 : vector<1x128xf32>
    %c27 = arith.constant 27 : index
    %82 = memref.load %arg1[%c27] : memref<66xf32, #tpu.memory_space<smem>>
    %83 = vector.broadcast %82 : f32 to vector<1x128xf32>
    %84 = arith.addf %81, %83 : vector<1x128xf32>
    %cst_15 = arith.constant 0.000000e+00 : f32
    %85 = vector.broadcast %cst_15 : f32 to vector<1x128xf32>
    %86 = arith.subf %85, %84 : vector<1x128xf32>
    %87 = math.exp %86 : vector<1x128xf32>
    %cst_16 = arith.constant 1.000000e+00 : f32
    %88 = vector.broadcast %cst_16 : f32 to vector<1x128xf32>
    %89 = arith.addf %88, %87 : vector<1x128xf32>
    %cst_17 = arith.constant 1.000000e+00 : f32
    %90 = vector.broadcast %cst_17 : f32 to vector<1x128xf32>
    %91 = arith.divf %90, %89 : vector<1x128xf32>
    %c15 = arith.constant 15 : index
    %92 = memref.load %arg1[%c15] : memref<66xf32, #tpu.memory_space<smem>>
    %93 = vector.broadcast %92 : f32 to vector<1x128xf32>
    %94 = arith.mulf %0, %93 : vector<1x128xf32>
    %c16 = arith.constant 16 : index
    %95 = memref.load %arg1[%c16] : memref<66xf32, #tpu.memory_space<smem>>
    %96 = vector.broadcast %95 : f32 to vector<1x128xf32>
    %97 = arith.mulf %1, %96 : vector<1x128xf32>
    %98 = arith.addf %94, %97 : vector<1x128xf32>
    %c17 = arith.constant 17 : index
    %99 = memref.load %arg1[%c17] : memref<66xf32, #tpu.memory_space<smem>>
    %100 = vector.broadcast %99 : f32 to vector<1x128xf32>
    %101 = arith.mulf %2, %100 : vector<1x128xf32>
    %102 = arith.addf %98, %101 : vector<1x128xf32>
    %c18 = arith.constant 18 : index
    %103 = memref.load %arg1[%c18] : memref<66xf32, #tpu.memory_space<smem>>
    %104 = vector.broadcast %103 : f32 to vector<1x128xf32>
    %105 = arith.mulf %3, %104 : vector<1x128xf32>
    %106 = arith.addf %102, %105 : vector<1x128xf32>
    %c19 = arith.constant 19 : index
    %107 = memref.load %arg1[%c19] : memref<66xf32, #tpu.memory_space<smem>>
    %108 = vector.broadcast %107 : f32 to vector<1x128xf32>
    %109 = arith.mulf %4, %108 : vector<1x128xf32>
    %110 = arith.addf %106, %109 : vector<1x128xf32>
    %c28 = arith.constant 28 : index
    %111 = memref.load %arg1[%c28] : memref<66xf32, #tpu.memory_space<smem>>
    %112 = vector.broadcast %111 : f32 to vector<1x128xf32>
    %113 = arith.addf %110, %112 : vector<1x128xf32>
    %cst_18 = arith.constant 0.000000e+00 : f32
    %114 = vector.broadcast %cst_18 : f32 to vector<1x128xf32>
    %115 = arith.subf %114, %113 : vector<1x128xf32>
    %116 = math.exp %115 : vector<1x128xf32>
    %cst_19 = arith.constant 1.000000e+00 : f32
    %117 = vector.broadcast %cst_19 : f32 to vector<1x128xf32>
    %118 = arith.addf %117, %116 : vector<1x128xf32>
    %cst_20 = arith.constant 1.000000e+00 : f32
    %119 = vector.broadcast %cst_20 : f32 to vector<1x128xf32>
    %120 = arith.divf %119, %118 : vector<1x128xf32>
    %c20 = arith.constant 20 : index
    %121 = memref.load %arg1[%c20] : memref<66xf32, #tpu.memory_space<smem>>
    %122 = vector.broadcast %121 : f32 to vector<1x128xf32>
    %123 = arith.mulf %0, %122 : vector<1x128xf32>
    %c21 = arith.constant 21 : index
    %124 = memref.load %arg1[%c21] : memref<66xf32, #tpu.memory_space<smem>>
    %125 = vector.broadcast %124 : f32 to vector<1x128xf32>
    %126 = arith.mulf %1, %125 : vector<1x128xf32>
    %127 = arith.addf %123, %126 : vector<1x128xf32>
    %c22 = arith.constant 22 : index
    %128 = memref.load %arg1[%c22] : memref<66xf32, #tpu.memory_space<smem>>
    %129 = vector.broadcast %128 : f32 to vector<1x128xf32>
    %130 = arith.mulf %2, %129 : vector<1x128xf32>
    %131 = arith.addf %127, %130 : vector<1x128xf32>
    %c23 = arith.constant 23 : index
    %132 = memref.load %arg1[%c23] : memref<66xf32, #tpu.memory_space<smem>>
    %133 = vector.broadcast %132 : f32 to vector<1x128xf32>
    %134 = arith.mulf %3, %133 : vector<1x128xf32>
    %135 = arith.addf %131, %134 : vector<1x128xf32>
    %c24 = arith.constant 24 : index
    %136 = memref.load %arg1[%c24] : memref<66xf32, #tpu.memory_space<smem>>
    %137 = vector.broadcast %136 : f32 to vector<1x128xf32>
    %138 = arith.mulf %4, %137 : vector<1x128xf32>
    %139 = arith.addf %135, %138 : vector<1x128xf32>
    %c29 = arith.constant 29 : index
    %140 = memref.load %arg1[%c29] : memref<66xf32, #tpu.memory_space<smem>>
    %141 = vector.broadcast %140 : f32 to vector<1x128xf32>
    %142 = arith.addf %139, %141 : vector<1x128xf32>
    %cst_21 = arith.constant 0.000000e+00 : f32
    %143 = vector.broadcast %cst_21 : f32 to vector<1x128xf32>
    %144 = arith.subf %143, %142 : vector<1x128xf32>
    %145 = math.exp %144 : vector<1x128xf32>
    %cst_22 = arith.constant 1.000000e+00 : f32
    %146 = vector.broadcast %cst_22 : f32 to vector<1x128xf32>
    %147 = arith.addf %146, %145 : vector<1x128xf32>
    %cst_23 = arith.constant 1.000000e+00 : f32
    %148 = vector.broadcast %cst_23 : f32 to vector<1x128xf32>
    %149 = arith.divf %148, %147 : vector<1x128xf32>
    %c30 = arith.constant 30 : index
    %150 = memref.load %arg1[%c30] : memref<66xf32, #tpu.memory_space<smem>>
    %151 = vector.broadcast %150 : f32 to vector<1x128xf32>
    %152 = arith.mulf %33, %151 : vector<1x128xf32>
    %c31 = arith.constant 31 : index
    %153 = memref.load %arg1[%c31] : memref<66xf32, #tpu.memory_space<smem>>
    %154 = vector.broadcast %153 : f32 to vector<1x128xf32>
    %155 = arith.mulf %62, %154 : vector<1x128xf32>
    %156 = arith.addf %152, %155 : vector<1x128xf32>
    %c32 = arith.constant 32 : index
    %157 = memref.load %arg1[%c32] : memref<66xf32, #tpu.memory_space<smem>>
    %158 = vector.broadcast %157 : f32 to vector<1x128xf32>
    %159 = arith.mulf %91, %158 : vector<1x128xf32>
    %160 = arith.addf %156, %159 : vector<1x128xf32>
    %c33 = arith.constant 33 : index
    %161 = memref.load %arg1[%c33] : memref<66xf32, #tpu.memory_space<smem>>
    %162 = vector.broadcast %161 : f32 to vector<1x128xf32>
    %163 = arith.mulf %120, %162 : vector<1x128xf32>
    %164 = arith.addf %160, %163 : vector<1x128xf32>
    %c34 = arith.constant 34 : index
    %165 = memref.load %arg1[%c34] : memref<66xf32, #tpu.memory_space<smem>>
    %166 = vector.broadcast %165 : f32 to vector<1x128xf32>
    %167 = arith.mulf %149, %166 : vector<1x128xf32>
    %168 = arith.addf %164, %167 : vector<1x128xf32>
    %c55 = arith.constant 55 : index
    %169 = memref.load %arg1[%c55] : memref<66xf32, #tpu.memory_space<smem>>
    %170 = vector.broadcast %169 : f32 to vector<1x128xf32>
    %171 = arith.addf %168, %170 : vector<1x128xf32>
    %cst_24 = arith.constant 0.000000e+00 : f32
    %172 = vector.broadcast %cst_24 : f32 to vector<1x128xf32>
    %173 = arith.subf %172, %171 : vector<1x128xf32>
    %174 = math.exp %173 : vector<1x128xf32>
    %cst_25 = arith.constant 1.000000e+00 : f32
    %175 = vector.broadcast %cst_25 : f32 to vector<1x128xf32>
    %176 = arith.addf %175, %174 : vector<1x128xf32>
    %cst_26 = arith.constant 1.000000e+00 : f32
    %177 = vector.broadcast %cst_26 : f32 to vector<1x128xf32>
    %178 = arith.divf %177, %176 : vector<1x128xf32>
    %c35 = arith.constant 35 : index
    %179 = memref.load %arg1[%c35] : memref<66xf32, #tpu.memory_space<smem>>
    %180 = vector.broadcast %179 : f32 to vector<1x128xf32>
    %181 = arith.mulf %33, %180 : vector<1x128xf32>
    %c36 = arith.constant 36 : index
    %182 = memref.load %arg1[%c36] : memref<66xf32, #tpu.memory_space<smem>>
    %183 = vector.broadcast %182 : f32 to vector<1x128xf32>
    %184 = arith.mulf %62, %183 : vector<1x128xf32>
    %185 = arith.addf %181, %184 : vector<1x128xf32>
    %c37 = arith.constant 37 : index
    %186 = memref.load %arg1[%c37] : memref<66xf32, #tpu.memory_space<smem>>
    %187 = vector.broadcast %186 : f32 to vector<1x128xf32>
    %188 = arith.mulf %91, %187 : vector<1x128xf32>
    %189 = arith.addf %185, %188 : vector<1x128xf32>
    %c38 = arith.constant 38 : index
    %190 = memref.load %arg1[%c38] : memref<66xf32, #tpu.memory_space<smem>>
    %191 = vector.broadcast %190 : f32 to vector<1x128xf32>
    %192 = arith.mulf %120, %191 : vector<1x128xf32>
    %193 = arith.addf %189, %192 : vector<1x128xf32>
    %c39 = arith.constant 39 : index
    %194 = memref.load %arg1[%c39] : memref<66xf32, #tpu.memory_space<smem>>
    %195 = vector.broadcast %194 : f32 to vector<1x128xf32>
    %196 = arith.mulf %149, %195 : vector<1x128xf32>
    %197 = arith.addf %193, %196 : vector<1x128xf32>
    %c56 = arith.constant 56 : index
    %198 = memref.load %arg1[%c56] : memref<66xf32, #tpu.memory_space<smem>>
    %199 = vector.broadcast %198 : f32 to vector<1x128xf32>
    %200 = arith.addf %197, %199 : vector<1x128xf32>
    %cst_27 = arith.constant 0.000000e+00 : f32
    %201 = vector.broadcast %cst_27 : f32 to vector<1x128xf32>
    %202 = arith.subf %201, %200 : vector<1x128xf32>
    %203 = math.exp %202 : vector<1x128xf32>
    %cst_28 = arith.constant 1.000000e+00 : f32
    %204 = vector.broadcast %cst_28 : f32 to vector<1x128xf32>
    %205 = arith.addf %204, %203 : vector<1x128xf32>
    %cst_29 = arith.constant 1.000000e+00 : f32
    %206 = vector.broadcast %cst_29 : f32 to vector<1x128xf32>
    %207 = arith.divf %206, %205 : vector<1x128xf32>
    %c40 = arith.constant 40 : index
    %208 = memref.load %arg1[%c40] : memref<66xf32, #tpu.memory_space<smem>>
    %209 = vector.broadcast %208 : f32 to vector<1x128xf32>
    %210 = arith.mulf %33, %209 : vector<1x128xf32>
    %c41 = arith.constant 41 : index
    %211 = memref.load %arg1[%c41] : memref<66xf32, #tpu.memory_space<smem>>
    %212 = vector.broadcast %211 : f32 to vector<1x128xf32>
    %213 = arith.mulf %62, %212 : vector<1x128xf32>
    %214 = arith.addf %210, %213 : vector<1x128xf32>
    %c42 = arith.constant 42 : index
    %215 = memref.load %arg1[%c42] : memref<66xf32, #tpu.memory_space<smem>>
    %216 = vector.broadcast %215 : f32 to vector<1x128xf32>
    %217 = arith.mulf %91, %216 : vector<1x128xf32>
    %218 = arith.addf %214, %217 : vector<1x128xf32>
    %c43 = arith.constant 43 : index
    %219 = memref.load %arg1[%c43] : memref<66xf32, #tpu.memory_space<smem>>
    %220 = vector.broadcast %219 : f32 to vector<1x128xf32>
    %221 = arith.mulf %120, %220 : vector<1x128xf32>
    %222 = arith.addf %218, %221 : vector<1x128xf32>
    %c44 = arith.constant 44 : index
    %223 = memref.load %arg1[%c44] : memref<66xf32, #tpu.memory_space<smem>>
    %224 = vector.broadcast %223 : f32 to vector<1x128xf32>
    %225 = arith.mulf %149, %224 : vector<1x128xf32>
    %226 = arith.addf %222, %225 : vector<1x128xf32>
    %c57 = arith.constant 57 : index
    %227 = memref.load %arg1[%c57] : memref<66xf32, #tpu.memory_space<smem>>
    %228 = vector.broadcast %227 : f32 to vector<1x128xf32>
    %229 = arith.addf %226, %228 : vector<1x128xf32>
    %cst_30 = arith.constant 0.000000e+00 : f32
    %230 = vector.broadcast %cst_30 : f32 to vector<1x128xf32>
    %231 = arith.subf %230, %229 : vector<1x128xf32>
    %232 = math.exp %231 : vector<1x128xf32>
    %cst_31 = arith.constant 1.000000e+00 : f32
    %233 = vector.broadcast %cst_31 : f32 to vector<1x128xf32>
    %234 = arith.addf %233, %232 : vector<1x128xf32>
    %cst_32 = arith.constant 1.000000e+00 : f32
    %235 = vector.broadcast %cst_32 : f32 to vector<1x128xf32>
    %236 = arith.divf %235, %234 : vector<1x128xf32>
    %c45 = arith.constant 45 : index
    %237 = memref.load %arg1[%c45] : memref<66xf32, #tpu.memory_space<smem>>
    %238 = vector.broadcast %237 : f32 to vector<1x128xf32>
    %239 = arith.mulf %33, %238 : vector<1x128xf32>
    %c46 = arith.constant 46 : index
    %240 = memref.load %arg1[%c46] : memref<66xf32, #tpu.memory_space<smem>>
    %241 = vector.broadcast %240 : f32 to vector<1x128xf32>
    %242 = arith.mulf %62, %241 : vector<1x128xf32>
    %243 = arith.addf %239, %242 : vector<1x128xf32>
    %c47 = arith.constant 47 : index
    %244 = memref.load %arg1[%c47] : memref<66xf32, #tpu.memory_space<smem>>
    %245 = vector.broadcast %244 : f32 to vector<1x128xf32>
    %246 = arith.mulf %91, %245 : vector<1x128xf32>
    %247 = arith.addf %243, %246 : vector<1x128xf32>
    %c48 = arith.constant 48 : index
    %248 = memref.load %arg1[%c48] : memref<66xf32, #tpu.memory_space<smem>>
    %249 = vector.broadcast %248 : f32 to vector<1x128xf32>
    %250 = arith.mulf %120, %249 : vector<1x128xf32>
    %251 = arith.addf %247, %250 : vector<1x128xf32>
    %c49 = arith.constant 49 : index
    %252 = memref.load %arg1[%c49] : memref<66xf32, #tpu.memory_space<smem>>
    %253 = vector.broadcast %252 : f32 to vector<1x128xf32>
    %254 = arith.mulf %149, %253 : vector<1x128xf32>
    %255 = arith.addf %251, %254 : vector<1x128xf32>
    %c58 = arith.constant 58 : index
    %256 = memref.load %arg1[%c58] : memref<66xf32, #tpu.memory_space<smem>>
    %257 = vector.broadcast %256 : f32 to vector<1x128xf32>
    %258 = arith.addf %255, %257 : vector<1x128xf32>
    %cst_33 = arith.constant 0.000000e+00 : f32
    %259 = vector.broadcast %cst_33 : f32 to vector<1x128xf32>
    %260 = arith.subf %259, %258 : vector<1x128xf32>
    %261 = math.exp %260 : vector<1x128xf32>
    %cst_34 = arith.constant 1.000000e+00 : f32
    %262 = vector.broadcast %cst_34 : f32 to vector<1x128xf32>
    %263 = arith.addf %262, %261 : vector<1x128xf32>
    %cst_35 = arith.constant 1.000000e+00 : f32
    %264 = vector.broadcast %cst_35 : f32 to vector<1x128xf32>
    %265 = arith.divf %264, %263 : vector<1x128xf32>
    %c50 = arith.constant 50 : index
    %266 = memref.load %arg1[%c50] : memref<66xf32, #tpu.memory_space<smem>>
    %267 = vector.broadcast %266 : f32 to vector<1x128xf32>
    %268 = arith.mulf %33, %267 : vector<1x128xf32>
    %c51 = arith.constant 51 : index
    %269 = memref.load %arg1[%c51] : memref<66xf32, #tpu.memory_space<smem>>
    %270 = vector.broadcast %269 : f32 to vector<1x128xf32>
    %271 = arith.mulf %62, %270 : vector<1x128xf32>
    %272 = arith.addf %268, %271 : vector<1x128xf32>
    %c52 = arith.constant 52 : index
    %273 = memref.load %arg1[%c52] : memref<66xf32, #tpu.memory_space<smem>>
    %274 = vector.broadcast %273 : f32 to vector<1x128xf32>
    %275 = arith.mulf %91, %274 : vector<1x128xf32>
    %276 = arith.addf %272, %275 : vector<1x128xf32>
    %c53 = arith.constant 53 : index
    %277 = memref.load %arg1[%c53] : memref<66xf32, #tpu.memory_space<smem>>
    %278 = vector.broadcast %277 : f32 to vector<1x128xf32>
    %279 = arith.mulf %120, %278 : vector<1x128xf32>
    %280 = arith.addf %276, %279 : vector<1x128xf32>
    %c54 = arith.constant 54 : index
    %281 = memref.load %arg1[%c54] : memref<66xf32, #tpu.memory_space<smem>>
    %282 = vector.broadcast %281 : f32 to vector<1x128xf32>
    %283 = arith.mulf %149, %282 : vector<1x128xf32>
    %284 = arith.addf %280, %283 : vector<1x128xf32>
    %c59 = arith.constant 59 : index
    %285 = memref.load %arg1[%c59] : memref<66xf32, #tpu.memory_space<smem>>
    %286 = vector.broadcast %285 : f32 to vector<1x128xf32>
    %287 = arith.addf %284, %286 : vector<1x128xf32>
    %cst_36 = arith.constant 0.000000e+00 : f32
    %288 = vector.broadcast %cst_36 : f32 to vector<1x128xf32>
    %289 = arith.subf %288, %287 : vector<1x128xf32>
    %290 = math.exp %289 : vector<1x128xf32>
    %cst_37 = arith.constant 1.000000e+00 : f32
    %291 = vector.broadcast %cst_37 : f32 to vector<1x128xf32>
    %292 = arith.addf %291, %290 : vector<1x128xf32>
    %cst_38 = arith.constant 1.000000e+00 : f32
    %293 = vector.broadcast %cst_38 : f32 to vector<1x128xf32>
    %294 = arith.divf %293, %292 : vector<1x128xf32>
    %c60 = arith.constant 60 : index
    %295 = memref.load %arg1[%c60] : memref<66xf32, #tpu.memory_space<smem>>
    %296 = vector.broadcast %295 : f32 to vector<1x128xf32>
    %297 = arith.mulf %178, %296 : vector<1x128xf32>
    %c61 = arith.constant 61 : index
    %298 = memref.load %arg1[%c61] : memref<66xf32, #tpu.memory_space<smem>>
    %299 = vector.broadcast %298 : f32 to vector<1x128xf32>
    %300 = arith.mulf %207, %299 : vector<1x128xf32>
    %301 = arith.addf %297, %300 : vector<1x128xf32>
    %c62 = arith.constant 62 : index
    %302 = memref.load %arg1[%c62] : memref<66xf32, #tpu.memory_space<smem>>
    %303 = vector.broadcast %302 : f32 to vector<1x128xf32>
    %304 = arith.mulf %236, %303 : vector<1x128xf32>
    %305 = arith.addf %301, %304 : vector<1x128xf32>
    %c63 = arith.constant 63 : index
    %306 = memref.load %arg1[%c63] : memref<66xf32, #tpu.memory_space<smem>>
    %307 = vector.broadcast %306 : f32 to vector<1x128xf32>
    %308 = arith.mulf %265, %307 : vector<1x128xf32>
    %309 = arith.addf %305, %308 : vector<1x128xf32>
    %c64 = arith.constant 64 : index
    %310 = memref.load %arg1[%c64] : memref<66xf32, #tpu.memory_space<smem>>
    %311 = vector.broadcast %310 : f32 to vector<1x128xf32>
    %312 = arith.mulf %294, %311 : vector<1x128xf32>
    %313 = arith.addf %309, %312 : vector<1x128xf32>
    %c65 = arith.constant 65 : index
    %314 = memref.load %arg1[%c65] : memref<66xf32, #tpu.memory_space<smem>>
    %315 = vector.broadcast %314 : f32 to vector<1x128xf32>
    %316 = arith.addf %313, %315 : vector<1x128xf32>
    %cst_39 = arith.constant 0.000000e+00 : f32
    %317 = vector.broadcast %cst_39 : f32 to vector<1x128xf32>
    %318 = arith.subf %317, %316 : vector<1x128xf32>
    %319 = math.exp %318 : vector<1x128xf32>
    %cst_40 = arith.constant 1.000000e+00 : f32
    %320 = vector.broadcast %cst_40 : f32 to vector<1x128xf32>
    %321 = arith.addf %320, %319 : vector<1x128xf32>
    %cst_41 = arith.constant 1.000000e+00 : f32
    %322 = vector.broadcast %cst_41 : f32 to vector<1x128xf32>
    %323 = arith.divf %322, %321 : vector<1x128xf32>
    %c0_42 = arith.constant 0 : index
    %c0_43 = arith.constant 0 : index
    %324 = vector.load %arg3[%c0_42, %c0_43] : memref<1x128xf32, #tpu.memory_space<vmem>>, vector<1x128xf32>
    tpu.vector_store %arg3[%c0_42, %c0_43], %323 {strides = array<i32>} : memref<1x128xf32, #tpu.memory_space<vmem>>, vector<1x128xf32>,
    return
  }
  func.func @transform_0(%arg0: i32, %arg1: memref<66xf32, #tpu.memory_space<smem>>) -> (i32, i32) {
    %c0_i32 = arith.constant 0 : i32
    %c0_i32_0 = arith.constant 0 : i32
    return %c0_i32, %arg0 : i32, i32
  }
  func.func @transform_1(%arg0: i32, %arg1: memref<66xf32, #tpu.memory_space<smem>>) -> (i32, i32) {
    %c0_i32 = arith.constant 0 : i32
    %c0_i32_0 = arith.constant 0 : i32
    return %c0_i32, %arg0 : i32, i32
  }
}

</mosaic_0001>

<bundles_post_ra>
// kernel: tpu_custom_call.1
= control target key start
LH: loop header
LB: loop body
LE: loop exit
PB: predicated region body
PF: predicated region fallthrough
CT: control target
= control target key end

     0   :  { %s684_s12 = smov [#allocation3]   ;;  %s1072_s0 = inlined_call_operand.hbm [shape: f32[66], index: 0, kind: input, shape index: {}]   ;;  %s1073_s1 = inlined_call_operand.hbm [shape: f32[5,128], index: 1, kind: input, shape index: {}]   ;;  %s1074_s2 = inlined_call_operand.hbm [shape: f32[1,128], index: 2, kind: output, shape index: {}]  }
   0x1   :  { %s8_s11 = sshll.u32 %s1072_s0, 4  ;;  %s9_s11 = int_to_ptr.hbm [resolvable:$true] %s8_s11 }
   0x2   :  { %11 = dma.hbm_to_smem %s9_s11, 16, %s684_s12, [#allocation2] }
   0x3   :  { %678 = dma.done.wait [#allocation2], 16 }
   0x4   :  { %679 = vsyncadd [#allocation2], 4294967280 }
   0x5   :  { %14 = sfence }
   0x6   :  { %15 = vsyncpa [#allocation5], 0 }
   0x7   :  { %16 = vsyncpa [#allocation6], 0  ;;  %s22_s15 = sshll.u32 %s1073_s1, 4  ;;  %s685_s16 = smov [#allocation4]   ;;  %s23_s15 = int_to_ptr.hbm [resolvable:$true] %s22_s15 }
   0x8   :  { %s24_s17 = sshll.u32 %s685_s16, 4  ;;  %s25_s17 = int_to_ptr.vmem [resolvable:$true] %s24_s17 }
   0x9   :  { %27 = dma.hbm_to_vmem [thread:$0]  %s23_s15, 128, %s25_s17, [#allocation5]  }
   0xa   :  { %680 = dma.done.wait [#allocation5], 128  }
   0xb   :  { %681 = vsyncadd [#allocation5], 4294967168  ;;  %s37_s0 = sld [smem:[#allocation3]]  ;;  %v710_v0 = vld [vmem:[#allocation4] sm:$0x1] }
   0xc   :  { %s506_s18 = sld [smem:[#allocation3 + $0x1]]  ;;  %v712_v1 = vld [vmem:[#allocation4 + $0x1] sm:$0x1]  ;;  %v714_v2 = vld [vmem:[#allocation4 + $0x2] sm:$0x1] }
   0xd   :  { %s507_s19 = sld [smem:[#allocation3 + $0x2]]  ;;  %v716_v4 = vld [vmem:[#allocation4 + $0x3] sm:$0x1]  ;;  %v720_v9 = vld [vmem:[#allocation4 + $0x4] sm:$0x1] }
   0xe   :  { %s508_s20 = sld [smem:[#allocation3 + $0x3]] }
   0xf   :  { %s509_s21 = sld [smem:[#allocation3 + $0x4]] }
  0x10   :  { %s708_s22 = sld [smem:[#allocation3 + $0x19]] }
  0x11   :  { %v38_v3 = vstv %s37_s0  ;;  %s511_s1 = sld [smem:[#allocation3 + $0x5]] }
  0x12   :  { %v39_v5 = vmul.f32 %v38_v3, %v710_v0  ;;  %v41_v6 = vstv %s506_s18  ;;  %s512_s23 = sld [smem:[#allocation3 + $0x6]] }
  0x13   :  { %v42_v7 = vmul.f32 %v41_v6, %v712_v1  ;;  %v45_v8 = vstv %s507_s19  ;;  %s513_s24 = sld [smem:[#allocation3 + $0x7]] }
  0x14   :  { %v46_v10 = vmul.f32 %v45_v8, %v714_v2  ;;  %v49_v11 = vstv %s508_s20  ;;  %s514_s25 = sld [smem:[#allocation3 + $0x8]] }
  0x15   :  { %v43_v12 = vadd.f32 %v42_v7, %v39_v5  ;;  %v50_v13 = vmul.f32 %v49_v11, %v716_v4  ;;  %v53_v14 = vstv %s509_s21  ;;  %s515_s26 = sld [smem:[#allocation3 + $0x9]] }
  0x16   :  { %v54_v16 = vmul.f32 %v53_v14, %v720_v9  ;;  %s725_s27 = sld [smem:[#allocation3 + $0x1a]]  ;;  %v57_v21 = vstv %s708_s22 }
  0x17   :  { %v47_v15 = vadd.f32 %v46_v10, %v43_v12  ;;  %v79_v17 = vstv %s511_s1  ;;  %s517_s28 = sld [smem:[#allocation3 + $0xa]] }
  0x18   :  { %v80_v19 = vmul.f32 %v79_v17, %v710_v0  ;;  %v82_v20 = vstv %s512_s23  ;;  %s518_s29 = sld [smem:[#allocation3 + $0xb]] }
  0x19   :  { %v51_v18 = vadd.f32 %v50_v13, %v47_v15  ;;  %v83_v22 = vmul.f32 %v82_v20, %v712_v1  ;;  %v86_v23 = vstv %s513_s24  ;;  %s519_s30 = sld [smem:[#allocation3 + $0xc]] }
  0x1a   :  { %v87_v25 = vmul.f32 %v86_v23, %v714_v2  ;;  %v90_v26 = vstv %s514_s25  ;;  %s520_s3 = sld [smem:[#allocation3 + $0xd]] }
  0x1b   :  { %v55_v24 = vadd.f32 %v54_v16, %v51_v18  ;;  %v84_v27 = vadd.f32 %v83_v22, %v80_v19  ;;  %v91_v28 = vmul.f32 %v90_v26, %v716_v4  ;;  %v94_v29 = vstv %s515_s26  ;;  %s521_s4 = sld [smem:[#allocation3 + $0xe]] }
  0x1c   :  { %s732_s5 = sld [smem:[#allocation3 + $0x1b]]  ;;  %v95_v32 = vmul.f32 %v94_v29, %v720_v9  ;;  %v98_v41 = vstv %s725_s27 }
  0x1d   :  { %v58_v30 = vadd.f32 %v57_v21, %v55_v24  ;;  %v88_v31 = vadd.f32 %v87_v25, %v84_v27  ;;  %v120_v33 = vstv %s517_s28  ;;  %s523_s6 = sld [smem:[#allocation3 + $0xf]] }
  0x1e   :  { %v121_v35 = vmul.f32 %v120_v33, %v710_v0  ;;  %v123_v36 = vstv %s518_s29  ;;  %s524_s7 = sld [smem:[#allocation3 + $0x10]] }
  0x1f   :  { %v59_v34 = vsub.f32 0.0, %v58_v30  ;;  %v92_v37 = vadd.f32 %v91_v28, %v88_v31  ;;  %v124_v38 = vmul.f32 %v123_v36, %v712_v1  ;;  %v127_v39 = vstv %s519_s30  ;;  %s525_s8 = sld [smem:[#allocation3 + $0x11]] }
  0x20   :  { %v128_v42 = vmul.f32 %v127_v39, %v714_v2  ;;  %v131_v43 = vstv %s520_s3  ;;  %s526_s9 = sld [smem:[#allocation3 + $0x12]] }
  0x21   :  { %v60_v40 = vmul.f32 1.442695, %v59_v34  ;;  %v96_v44 = vadd.f32 %v95_v32, %v92_v37  ;;  %v125_v45 = vadd.f32 %v124_v38, %v121_v35  ;;  %v132_v46 = vmul.f32 %v131_v43, %v716_v4  ;;  %s740_s10 = sld [smem:[#allocation3 + $0x13]] }
  0x22   :  { %v135_v47 = vstv %s521_s4  ;;  %s742_s11 = sld [smem:[#allocation3 + $0x1c]]  ;;  %v139_v58 = vstv %s732_s5 }
  0x23   :  { %574 = vpow2.f32 %v60_v40  ;;  %v99_v48 = vadd.f32 %v98_v41, %v96_v44  ;;  %v129_v49 = vadd.f32 %v128_v42, %v125_v45  ;;  %v136_v50 = vmul.f32 %v135_v47, %v720_v9  ;;  %s529_s12 = sld [smem:[#allocation3 + $0x14]] }
  0x24   :  { %v161_v51 = vstv %s523_s6  ;;  %v164_v53 = vstv %s524_s7  ;;  %s530_s13 = sld [smem:[#allocation3 + $0x15]] }
  0x25   :  { %v162_v52 = vmul.f32 %v161_v51, %v710_v0  ;;  %v100_v54 = vsub.f32 0.0, %v99_v48  ;;  %v133_v55 = vadd.f32 %v132_v46, %v129_v49  ;;  %v165_v56 = vmul.f32 %v164_v53, %v712_v1  ;;  %s747_s14 = sld [smem:[#allocation3 + $0x16]] }
  0x26   :  { %v168_v57 = vstv %s525_s8  ;;  %v172_v60 = vstv %s526_s9  ;;  %s532_s15 = sld [smem:[#allocation3 + $0x17]] }
  0x27   :  { %v169_v59 = vmul.f32 %v168_v57, %v714_v2  ;;  %v101_v61 = vmul.f32 1.442695, %v100_v54  ;;  %v137_v62 = vadd.f32 %v136_v50, %v133_v55  ;;  %v166_v63 = vadd.f32 %v165_v56, %v162_v52  ;;  %s751_s16 = sld [smem:[#allocation3 + $0x18]] }
  0x28   :  { %v173_v5 = vmul.f32 %v172_v60, %v716_v4  ;;  %v176_v6 = vstv %s740_s10  ;;  %s761_s17 = sld [smem:[#allocation3 + $0x1d]]  ;;  %v180_v18 = vstv %s742_s11 }
  0x29   :  { %v575_v3 = vpop.eup %574  ;;  %576 = vpow2.f32 %v101_v61  ;;  %v140_v8 = vadd.f32 %v139_v58, %v137_v62  ;;  %v170_v10 = vadd.f32 %v169_v59, %v166_v63  ;;  %v177_v11 = vmul.f32 %v176_v6, %v720_v9  ;;  %s768_s0 = sld [smem:[#allocation3 + $0x1e]] }
  0x2a   :  { %v755_v7 = vadd.f32 1.0, %v575_v3  ;;  %v202_v12 = vstv %s529_s12  ;;  %v205_v13 = vstv %s530_s13  ;;  %s773_s18 = sld [smem:[#allocation3 + $0x1f]] }
  0x2b   :  { %v141_v14 = vsub.f32 0.0, %v140_v8  ;;  %v174_v15 = vadd.f32 %v173_v5, %v170_v10  ;;  %v203_v16 = vmul.f32 %v202_v12, %v710_v0  ;;  %v206_v17 = vmul.f32 %v205_v13, %v712_v1  ;;  %s777_s19 = sld [smem:[#allocation3 + $0x20]] }
  0x2c   :  { %578 = vrcp.f32 %v755_v7  ;;  %v209_v19 = vstv %s747_s14  ;;  %v213_v20 = vstv %s532_s15  ;;  %s779_s20 = sld [smem:[#allocation3 + $0x21]]  ;;  %vm68_vm0 = vweird.f32 %v755_v7 }
  0x2d   :  { %v142_v21 = vmul.f32 1.442695, %v141_v14  ;;  %v178_v22 = vadd.f32 %v177_v11, %v174_v15  ;;  %v207_v23 = vadd.f32 %v206_v17, %v203_v16  ;;  %v210_v24 = vmul.f32 %v209_v19, %v714_v2  ;;  %s782_s21 = sld [smem:[#allocation3 + $0x23]] }
  0x2e   :  { %v214_v26 = vmul.f32 %v213_v20, %v716_v4  ;;  %v217_v27 = vstv %s751_s16  ;;  %v221_v33 = vstv %s761_s17  ;;  %s785_s22 = sld [smem:[#allocation3 + $0x24]]  ;;  %v72_v37 = vand.u32 2147483647, %v755_v7 }
  0x2f   :  { %v577_v25 = vpop.eup %576  ;;  %580 = vpow2.f32 %v142_v21  ;;  %v181_v0 = vadd.f32 %v180_v18, %v178_v22  ;;  %v211_v29 = vadd.f32 %v210_v24, %v207_v23  ;;  %v218_v30 = vmul.f32 %v217_v27, %v720_v9  ;;  %s791_s1 = sld [smem:[#allocation3 + $0x25]] }
  0x30   :  { %v103_v28 = vadd.f32 1.0, %v577_v25  ;;  %v74_v38 = vand.u32 2147483648, %v755_v7  ;;  %s795_s23 = sld [smem:[#allocation3 + $0x26]]  ;;  %vm809_vm3 = vcmp.eq.f32.partialorder %v72_v37, 8.507059e+37  ;;  %v243_v51 = vstv %s768_s0 }
  0x31   :  { %v182_v4 = vsub.f32 0.0, %v181_v0  ;;  %v215_v31 = vadd.f32 %v214_v26, %v211_v29  ;;  %s798_s24 = sld [smem:[#allocation3 + $0x28]]  ;;  %v246_v54 = vstv %s773_s18  ;;  %v250_v55 = vstv %s777_s19 }
  0x32   :  { %v770_v1 = vpop.eup %578  ;;  %582 = vrcp.f32 %v103_v28  ;;  %v113_v45 = vand.u32 2147483647, %v103_v28  ;;  %s807_s25 = sld [smem:[#allocation3 + $0x29]]  ;;  %v75_v47 = vor.u32 1.1754944e-38, %v74_v38  ;;  %v115_v48 = vand.u32 2147483648, %v103_v28 }
  0x33   :  { %v64_v2 = vmul.f32 %v770_v1, %v755_v7  ;;  %v183_v34 = vmul.f32 1.442695, %v182_v4  ;;  %v219_v9 = vadd.f32 %v218_v30, %v215_v31  ;;  %vm69_vm1 = vweird.f32 %v770_v1  ;;  %s813_s26 = sld [smem:[#allocation3 + $0x2a]] }
  0x34   :  { %vm802_vm2 = vmor %vm68_vm0, %vm69_vm1  ;;  %vm109_vm4 = vweird.f32 %v103_v28  ;;  %s816_s27 = sld [smem:[#allocation3 + $0x2d]]  ;;  %vm825_vm6 = vcmp.eq.f32.partialorder %v113_v45, 8.507059e+37  ;;  %v116_v62 = vor.u32 1.1754944e-38, %v115_v48  ;;  %v254_v3 = vstv %s779_s20 }
  0x35   :  { %v65_v32 = vsub.f32 1.0, %v64_v2  ;;  %v581_v35 = vpop.eup %580  ;;  %584 = vpow2.f32 %v183_v34  ;;  %v222_v40 = vadd.f32 %v221_v33, %v219_v9  ;;  %s823_s28 = sld [smem:[#allocation3 + $0x2e]]  ;;  %v284_v8 = vstv %s782_s21 }
  0x36   :  { %v793_v39 = vadd.f32 1.0, %v581_v35  ;;  %s831_s29 = sld [smem:[#allocation3 + $0x2b]]  ;;  %v287_v10 = vstv %s785_s22  ;;  %v291_v12 = vstv %s791_s1  ;;  %v295_v13 = vstv %s795_s23  ;;  %s686_s1 = smov [#allocation7]  }
  0x37   :  { %v66_v36 = vmul.f32 %v770_v1, %v65_v32  ;;  %v223_v49 = vsub.f32 0.0, %v222_v40  ;;  %s851_s30 = sld [smem:[#allocation3 + $0x2f]]  ;;  %v325_v19 = vstv %s798_s24  ;;  %s494_s23 = sshll.u32 %s686_s1, 4  ;;  %s495_s23 = int_to_ptr.vmem [resolvable:$true] %s494_s23 }
  0x38   :  { %v583_v41 = vpop.eup %582  ;;  %586 = vrcp.f32 %v793_v39  ;;  %v154_v59 = vand.u32 2147483647, %v793_v39  ;;  %v156_v60 = vand.u32 2147483648, %v793_v39  ;;  %vm150_vm8 = vweird.f32 %v793_v39  ;;  %s860_s3 = sld [smem:[#allocation3 + $0x32]] }
  0x39   :  { %v67_v42 = vadd.f32 %v770_v1, %v66_v36  ;;  %v105_v44 = vmul.f32 %v583_v41, %v103_v28  ;;  %vm110_vm5 = vweird.f32 %v583_v41  ;;  %v224_v53 = vmul.f32 1.442695, %v223_v49  ;;  %s864_s4 = sld [smem:[#allocation3 + $0x30]] }
  0x3a   :  { %vm834_vm7 = vmor %vm109_vm4, %vm110_vm5  ;;  %vm856_vm9 = vcmp.eq.f32.partialorder %v154_v59, 8.507059e+37  ;;  %v157_v16 = vor.u32 1.1754944e-38, %v156_v60  ;;  %v328_v23 = vstv %s807_s25  ;;  %s871_s5 = sld [smem:[#allocation3 + $0x33]]  ;;  %v366_v27 = vstv %s816_s27 }
  0x3b   :  { %v106_v50 = vsub.f32 1.0, %v105_v44  ;;  %v71_v52 = vsel %vm802_vm2, %v770_v1, %v67_v42  ;;  %v585_v56 = vpop.eup %584  ;;  %588 = vpow2.f32 %v224_v53  ;;  %v369_v28 = vstv %s823_s28  ;;  %s876_s6 = sld [smem:[#allocation3 + $0x34]] }
  0x3c   :  { %v838_v63 = vadd.f32 1.0, %v585_v56  ;;  %v843_v6 = vsel %vm809_vm3, %v75_v47, %v71_v52  ;;  %v332_v30 = vstv %s813_s26  ;;  %v336_v2 = vstv %s831_s29  ;;  %s892_s7 = sld [smem:[#allocation3 + $0x22]]  ;;  %s496_s26 = sshll.u32 %s1074_s2, 4  ;;  %s497_s26 = int_to_ptr.hbm [resolvable:$true] %s496_s26 }
  0x3d   :  { %v107_v57 = vmul.f32 %v583_v41, %v106_v50  ;;  %v244_v18 = vmul.f32 %v243_v51, %v843_v6  ;;  %v285_v22 = vmul.f32 %v284_v8, %v843_v6  ;;  %v326_v1 = vmul.f32 %v325_v19, %v843_v6  ;;  %s902_s8 = sld [smem:[#allocation3 + $0x35]] }
  0x3e   :  { %v587_v5 = vpop.eup %586  ;;  %590 = vrcp.f32 %v838_v63  ;;  %v195_v21 = vand.u32 2147483647, %v838_v63  ;;  %v197_v26 = vand.u32 2147483648, %v838_v63  ;;  %v367_v35 = vmul.f32 %v366_v27, %v843_v6  ;;  %s906_s9 = sld [smem:[#allocation3 + $0x37]] }
  0x3f   :  { %v108_v7 = vadd.f32 %v583_v41, %v107_v57  ;;  %v146_v11 = vmul.f32 %v587_v5, %v793_v39  ;;  %vm151_vm10 = vweird.f32 %v587_v5  ;;  %vm191_vm12 = vweird.f32 %v838_v63  ;;  %s909_s10 = sld [smem:[#allocation3 + $0x27]] }
  0x40   :  { %vm881_vm11 = vmor %vm150_vm8, %vm151_vm10  ;;  %vm898_vm13 = vcmp.eq.f32.partialorder %v195_v21, 8.507059e+37  ;;  %v198_v39 = vor.u32 1.1754944e-38, %v197_v26  ;;  %v407_v42 = vstv %s860_s3  ;;  %v373_v46 = vstv %s851_s30  ;;  %s914_s11 = sld [smem:[#allocation3 + $0x2c]] }
  0x41   :  { %v112_v14 = vsel %vm834_vm7, %v583_v41, %v108_v7  ;;  %v147_v17 = vsub.f32 1.0, %v146_v11  ;;  %v589_v24 = vpop.eup %588  ;;  %v408_v50 = vmul.f32 %v407_v42, %v843_v6  ;;  %v377_v53 = vstv %s864_s4  ;;  %s924_s12 = sld [smem:[#allocation3 + $0x31]] }
  0x42   :  { %v117_v20 = vsel %vm825_vm6, %v116_v62, %v112_v14  ;;  %v885_v29 = vadd.f32 1.0, %v589_v24  ;;  %v414_v56 = vstv %s876_s6  ;;  %s928_s13 = sld [smem:[#allocation3 + $0x36]]  ;;  %v258_v26 = vstv %s892_s7 }
  0x43   :  { %v148_v25 = vmul.f32 %v587_v5, %v147_v17  ;;  %v247_v32 = vmul.f32 %v246_v54, %v117_v20  ;;  %v288_v33 = vmul.f32 %v287_v10, %v117_v20  ;;  %v329_v34 = vmul.f32 %v328_v23, %v117_v20  ;;  %s934_s14 = sld [smem:[#allocation3 + $0x38]] }
  0x44   :  { %v591_v4 = vpop.eup %590  ;;  %592 = vrcp.f32 %v885_v29  ;;  %v370_v36 = vmul.f32 %v369_v28, %v117_v20  ;;  %v410_v54 = vstv %s871_s5  ;;  %vm232_vm0 = vweird.f32 %v885_v29  ;;  %s938_s15 = sld [smem:[#allocation3 + $0x39]] }
  0x45   :  { %v149_v31 = vadd.f32 %v587_v5, %v148_v25  ;;  %v187_v9 = vmul.f32 %v591_v4, %v838_v63  ;;  %vm192_vm14 = vweird.f32 %v591_v4  ;;  %v248_v43 = vadd.f32 %v247_v32, %v244_v18  ;;  %s942_s16 = sld [smem:[#allocation3 + $0x3a]] }
  0x46   :  { %v289_v44 = vadd.f32 %v288_v33, %v285_v22  ;;  %v330_v45 = vadd.f32 %v329_v34, %v326_v1  ;;  %v371_v49 = vadd.f32 %v370_v36, %v367_v35  ;;  %vm919_vm15 = vmor %vm191_vm12, %vm192_vm14  ;;  %v411_v60 = vmul.f32 %v410_v54, %v117_v20  ;;  %s947_s17 = sld [smem:[#allocation3 + $0x3b]] }
  0x47   :  { %v153_v37 = vsel %vm881_vm11, %v587_v5, %v149_v31  ;;  %v188_v41 = vsub.f32 1.0, %v187_v9  ;;  %v236_v62 = vand.u32 2147483647, %v885_v29  ;;  %v238_v63 = vand.u32 2147483648, %v885_v29  ;;  %s971_s0 = sld [smem:[#allocation3 + $0x3c]] }
  0x48   :  { %v158_v40 = vsel %vm856_vm9, %v157_v16, %v153_v37  ;;  %v412_v7 = vadd.f32 %v411_v60, %v408_v50  ;;  %v299_v27 = vstv %s909_s10  ;;  %v381_v0 = vstv %s924_s12  ;;  %s973_s18 = sld [smem:[#allocation3 + $0x3d]] }
  0x49   :  { %v189_v47 = vmul.f32 %v591_v4, %v188_v41  ;;  %v251_v48 = vmul.f32 %v250_v55, %v158_v40  ;;  %v292_v52 = vmul.f32 %v291_v12, %v158_v40  ;;  %v333_v55 = vmul.f32 %v332_v30, %v158_v40  ;;  %s975_s19 = sld [smem:[#allocation3 + $0x3e]] }
  0x4a   :  { %v593_v57 = vpop.eup %592  ;;  %v374_v59 = vmul.f32 %v373_v46, %v158_v40  ;;  %v415_v8 = vmul.f32 %v414_v56, %v158_v40  ;;  %v418_v12 = vstv %s902_s8  ;;  %vm237_vm3 = vcmp.eq.f32.partialorder %v236_v62, 8.507059e+37  ;;  %s1008_s20 = sld [smem:[#allocation3 + $0x3f]] }
  0x4b   :  { %v190_v58 = vadd.f32 %v591_v4, %v189_v47  ;;  %v228_v61 = vmul.f32 %v593_v57, %v885_v29  ;;  %v252_v6 = vadd.f32 %v251_v48, %v248_v43  ;;  %vm233_vm1 = vweird.f32 %v593_v57  ;;  %s1019_s21 = sld [smem:[#allocation3 + $0x40]] }
  0x4c   :  { %v293_v15 = vadd.f32 %v292_v52, %v289_v44  ;;  %v334_v16 = vadd.f32 %v333_v55, %v330_v45  ;;  %v375_v17 = vadd.f32 %v374_v59, %v371_v49  ;;  %vm955_vm2 = vmor %vm232_vm0, %vm233_vm1  ;;  %v416_v23 = vadd.f32 %v415_v8, %v412_v7  ;;  %s570_s22 = sld [smem:[#allocation3 + $0x41]] }
  0x4d   :  { %v194_v5 = vsel %vm919_vm15, %v591_v4, %v190_v58  ;;  %v229_v11 = vsub.f32 1.0, %v228_v61  ;;  %v422_v1 = vstv %s928_s13  ;;  %v262_v32 = vstv %s906_s9 }
  0x4e   :  { %v199_v10 = vsel %vm898_vm13, %v198_v39, %v194_v5  ;;  %v303_v33 = vstv %s934_s14  ;;  %v344_v38 = vstv %s938_s15  ;;  %v385_v39 = vstv %s942_s16 }
  0x4f   :  { %v255_v14 = vmul.f32 %v254_v3, %v199_v10  ;;  %v230_v18 = vmul.f32 %v593_v57, %v229_v11  ;;  %v296_v19 = vmul.f32 %v295_v13, %v199_v10  ;;  %v337_v20 = vmul.f32 %v336_v2, %v199_v10 }
  0x50   :  { %v378_v21 = vmul.f32 %v377_v53, %v199_v10  ;;  %v239_v3 = vor.u32 1.1754944e-38, %v238_v63  ;;  %v419_v24 = vmul.f32 %v418_v12, %v199_v10  ;;  %v340_v13 = vstv %s914_s11 }
  0x51   :  { %v231_v25 = vadd.f32 %v593_v57, %v230_v18  ;;  %v256_v28 = vadd.f32 %v255_v14, %v252_v6  ;;  %v297_v30 = vadd.f32 %v296_v19, %v293_v15  ;;  %v338_v2 = vadd.f32 %v337_v20, %v334_v16 }
  0x52   :  { %v379_v4 = vadd.f32 %v378_v21, %v375_v17  ;;  %v420_v34 = vadd.f32 %v419_v24, %v416_v23  ;;  %v426_v41 = vstv %s947_s17  ;;  %v448_v19 = vstv %s971_s0 }
  0x53   :  { %v235_v29 = vsel %vm955_vm2, %v593_v57, %v231_v25  ;;  %v451_v20 = vstv %s973_s18  ;;  %v455_v22 = vstv %s975_s19 }
  0x54   :  { %v240_v31 = vsel %vm237_vm3, %v239_v3, %v235_v29 }
  0x55   :  { %v259_v9 = vmul.f32 %v258_v26, %v240_v31  ;;  %v300_v35 = vmul.f32 %v299_v27, %v240_v31  ;;  %v341_v36 = vmul.f32 %v340_v13, %v240_v31  ;;  %v382_v37 = vmul.f32 %v381_v0, %v240_v31 }
  0x56   :  { %v423_v40 = vmul.f32 %v422_v1, %v240_v31 }
  0x57   :  { %v260_v42 = vadd.f32 %v259_v9, %v256_v28  ;;  %v301_v43 = vadd.f32 %v300_v35, %v297_v30  ;;  %v342_v44 = vadd.f32 %v341_v36, %v338_v2  ;;  %v383_v45 = vadd.f32 %v382_v37, %v379_v4 }
  0x58   :  { %v424_v46 = vadd.f32 %v423_v40, %v420_v34 }
  0x59   :  { %v263_v47 = vadd.f32 %v262_v32, %v260_v42  ;;  %v304_v48 = vadd.f32 %v303_v33, %v301_v43  ;;  %v345_v49 = vadd.f32 %v344_v38, %v342_v44  ;;  %v386_v50 = vadd.f32 %v385_v39, %v383_v45 }
  0x5a   :  { %v427_v51 = vadd.f32 %v426_v41, %v424_v46 }
  0x5b   :  { %v264_v52 = vsub.f32 0.0, %v263_v47  ;;  %v305_v53 = vsub.f32 0.0, %v304_v48  ;;  %v346_v54 = vsub.f32 0.0, %v345_v49  ;;  %v387_v56 = vsub.f32 0.0, %v386_v50 }
  0x5c   :  { %v428_v57 = vsub.f32 0.0, %v427_v51 }
  0x5d   :  { %v265_v58 = vmul.f32 1.442695, %v264_v52  ;;  %v306_v55 = vmul.f32 1.442695, %v305_v53  ;;  %v347_v59 = vmul.f32 1.442695, %v346_v54 }
  0x5e   :  { %v388_v60 = vmul.f32 1.442695, %v387_v56  ;;  %v429_v61 = vmul.f32 1.442695, %v428_v57 }
  0x5f   :  { %594 = vpow2.f32 %v265_v58 }
  0x60   :  { %596 = vpow2.f32 %v306_v55 }
  0x61   :  { %598 = vpow2.f32 %v347_v59 }
  0x62   :  { %600 = vpow2.f32 %v388_v60 }
  0x63   :  { %602 = vpow2.f32 %v429_v61 }
  0x65   :  { %v595_v62 = vpop.eup %594 }
  0x66   :  { %v597_v63 = vpop.eup %596  ;;  %v267_v5 = vadd.f32 1.0, %v595_v62 }
  0x67   :  { %v599_v6 = vpop.eup %598  ;;  %v308_v7 = vadd.f32 1.0, %v597_v63 }
  0x68   :  { %v601_v8 = vpop.eup %600  ;;  %604 = vrcp.f32 %v267_v5  ;;  %v977_v11 = vadd.f32 1.0, %v599_v6  ;;  %v277_v14 = vand.u32 2147483647, %v267_v5  ;;  %v279_v16 = vand.u32 2147483648, %v267_v5 }
  0x69   :  { %v603_v10 = vpop.eup %602  ;;  %606 = vrcp.f32 %v308_v7  ;;  %v979_v12 = vadd.f32 1.0, %v601_v8  ;;  %v318_v17 = vand.u32 2147483647, %v308_v7  ;;  %v320_v18 = vand.u32 2147483648, %v308_v7 }
  0x6a   :  { %v981_v15 = vadd.f32 1.0, %v603_v10  ;;  %608 = vrcp.f32 %v977_v11  ;;  %vm273_vm4 = vweird.f32 %v267_v5  ;;  %vm314_vm5 = vweird.f32 %v308_v7 }
  0x6b   :  { %610 = vrcp.f32 %v979_v12  ;;  %vm989_vm6 = vcmp.eq.f32.partialorder %v277_v14, 8.507059e+37  ;;  %v359_v25 = vand.u32 2147483647, %v977_v11  ;;  %v361_v26 = vand.u32 2147483648, %v977_v11 }
  0x6c   :  { %612 = vrcp.f32 %v981_v15  ;;  %v280_v27 = vor.u32 1.1754944e-38, %v279_v16  ;;  %vm995_vm7 = vcmp.eq.f32.partialorder %v318_v17, 8.507059e+37  ;;  %v321_v0 = vor.u32 1.1754944e-38, %v320_v18 }
  0x6d   :  { %vm355_vm9 = vweird.f32 %v977_v11  ;;  %vm396_vm10 = vweird.f32 %v979_v12  ;;  %v400_v2 = vand.u32 2147483647, %v979_v12  ;;  %v402_v4 = vand.u32 2147483648, %v979_v12 }
  0x6e   :  { %v605_v21 = vpop.eup %604  ;;  %vm1004_vm12 = vcmp.eq.f32.partialorder %v359_v25, 8.507059e+37  ;;  %v362_v9 = vor.u32 1.1754944e-38, %v361_v26  ;;  %vm437_vm14 = vweird.f32 %v981_v15  ;;  %v441_v39 = vand.u32 2147483647, %v981_v15 }
  0x6f   :  { %v607_v3 = vpop.eup %606  ;;  %v269_v23 = vmul.f32 %v605_v21, %v267_v5  ;;  %vm274_vm8 = vweird.f32 %v605_v21  ;;  %v443_v46 = vand.u32 2147483648, %v981_v15  ;;  %v403_v54 = vor.u32 1.1754944e-38, %v402_v4 }
  0x70   :  { %v310_v28 = vmul.f32 %v607_v3, %v308_v7  ;;  %v609_v29 = vpop.eup %608  ;;  %vm315_vm11 = vweird.f32 %v607_v3  ;;  %vm1012_vm13 = vmor %vm273_vm4, %vm274_vm8  ;;  %v459_v7 = vstv %s1008_s20 }
  0x71   :  { %v270_v1 = vsub.f32 1.0, %v269_v23  ;;  %v611_v31 = vpop.eup %610  ;;  %v351_v33 = vmul.f32 %v609_v29, %v977_v11  ;;  %vm1023_vm15 = vmor %vm314_vm5, %vm315_vm11  ;;  %vm356_vm0 = vweird.f32 %v609_v29  ;;  %vm401_vm5 = vcmp.eq.f32.partialorder %v400_v2, 8.507059e+37 }
  0x72   :  { %v311_v30 = vsub.f32 1.0, %v310_v28  ;;  %v613_v35 = vpop.eup %612  ;;  %v392_v38 = vmul.f32 %v611_v31, %v979_v12  ;;  %vm397_vm1 = vweird.f32 %v611_v31  ;;  %vm1037_vm3 = vmor %vm355_vm9, %vm356_vm0  ;;  %v444_v62 = vor.u32 1.1754944e-38, %v443_v46 }
  0x73   :  { %v271_v32 = vmul.f32 %v605_v21, %v270_v1  ;;  %v352_v42 = vsub.f32 1.0, %v351_v33  ;;  %v433_v43 = vmul.f32 %v613_v35, %v981_v15  ;;  %vm438_vm2 = vweird.f32 %v613_v35  ;;  %vm1045_vm4 = vmor %vm396_vm10, %vm397_vm1 }
  0x74   :  { %v312_v37 = vmul.f32 %v607_v3, %v311_v30  ;;  %v393_v45 = vsub.f32 1.0, %v392_v38  ;;  %v463_v12 = vstv %s1019_s21 }
  0x75   :  { %v272_v40 = vadd.f32 %v605_v21, %v271_v32  ;;  %v353_v48 = vmul.f32 %v609_v29, %v352_v42  ;;  %v434_v49 = vsub.f32 1.0, %v433_v43 }
  0x76   :  { %v313_v44 = vadd.f32 %v607_v3, %v312_v37  ;;  %v394_v53 = vmul.f32 %v611_v31, %v393_v45 }
  0x77   :  { %v276_v47 = vsel %vm1012_vm13, %v605_v21, %v272_v40  ;;  %v354_v57 = vadd.f32 %v609_v29, %v353_v48  ;;  %v435_v55 = vmul.f32 %v613_v35, %v434_v49 }
  0x78   :  { %v281_v50 = vsel %vm989_vm6, %v280_v27, %v276_v47  ;;  %v317_v51 = vsel %vm1023_vm15, %v607_v3, %v313_v44  ;;  %v395_v60 = vadd.f32 %v611_v31, %v394_v53  ;;  %vm1051_vm6 = vmor %vm437_vm14, %vm438_vm2  ;;  %v467_v3 = vstv %s570_s22 }
  0x79   :  { %v322_v56 = vsel %vm995_vm7, %v321_v0, %v317_v51  ;;  %v449_v59 = vmul.f32 %v448_v19, %v281_v50  ;;  %v358_v5 = vsel %vm1037_vm3, %v609_v29, %v354_v57  ;;  %v436_v6 = vadd.f32 %v613_v35, %v435_v55 }
  0x7a   :  { %v452_v63 = vmul.f32 %v451_v20, %v322_v56  ;;  %vm442_vm7 = vcmp.eq.f32.partialorder %v441_v39, 8.507059e+37  ;;  %v363_v8 = vsel %vm1004_vm12, %v362_v9, %v358_v5  ;;  %v399_v10 = vsel %vm1045_vm4, %v611_v31, %v395_v60 }
  0x7b   :  { %v404_v14 = vsel %vm401_vm5, %v403_v54, %v399_v10  ;;  %v440_v15 = vsel %vm1051_vm6, %v613_v35, %v436_v6  ;;  %v456_v16 = vmul.f32 %v455_v22, %v363_v8 }
  0x7c   :  { %v453_v11 = vadd.f32 %v452_v63, %v449_v59  ;;  %v445_v17 = vsel %vm442_vm7, %v444_v62, %v440_v15  ;;  %v460_v18 = vmul.f32 %v459_v7, %v404_v14 }
  0x7d   :  { %v464_v20 = vmul.f32 %v463_v12, %v445_v17 }
  0x7e   :  { %v457_v19 = vadd.f32 %v456_v16, %v453_v11 }
  0x80   :  { %v461_v21 = vadd.f32 %v460_v18, %v457_v19 }
  0x82   :  { %v465_v23 = vadd.f32 %v464_v20, %v461_v21 }
  0x84   :  { %v468_v24 = vadd.f32 %v467_v3, %v465_v23 }
  0x86   :  { %v469_v25 = vsub.f32 0.0, %v468_v24 }
  0x88   :  { %v470_v26 = vmul.f32 1.442695, %v469_v25 }
  0x8a   :  { %614 = vpow2.f32 %v470_v26 }
  0x90   :  { %v615_v27 = vpop.eup %614 }
  0x91   :  { %v472_v28 = vadd.f32 1.0, %v615_v27 }
  0x93   :  { %616 = vrcp.f32 %v472_v28  ;;  %v484_v1 = vand.u32 2147483648, %v472_v28  ;;  %vm478_vm8 = vweird.f32 %v472_v28  ;;  %v482_v22 = vand.u32 2147483647, %v472_v28 }
  0x95   :  { %v485_v2 = vor.u32 1.1754944e-38, %v484_v1  ;;  %vm483_vm11 = vcmp.eq.f32.partialorder %v482_v22, 8.507059e+37 }
  0x99   :  { %v617_v13 = vpop.eup %616 }
  0x9a   :  { %v474_v0 = vmul.f32 %v617_v13, %v472_v28  ;;  %vm479_vm9 = vweird.f32 %v617_v13 }
  0x9b   :  { %vm480_vm10 = vmor %vm478_vm8, %vm479_vm9 }
  0x9c   :  { %v475_v29 = vsub.f32 1.0, %v474_v0 }
  0x9e   :  { %v476_v30 = vmul.f32 %v617_v13, %v475_v29 }
  0xa0   :  { %v477_v4 = vadd.f32 %v617_v13, %v476_v30 }
  0xa2   :  { %v481_v31 = vsel %vm480_vm10, %v617_v13, %v477_v4 }
  0xa3   :  { %v486_v32 = vsel %vm483_vm11, %v485_v2, %v481_v31 }
  0xa4   :  { %488 = vst [vmem:[#allocation7] sm:$0x1] %v486_v32 }
  0xa5   :  { %499 = dma.vmem_to_hbm [thread:$0]  %s495_s23, 16, %s497_s26, [#allocation6]  }
  0xa6   :  { %682 = dma.done.wait [#allocation6], 16  }
  0xa7   :  { %683 = vsyncadd [#allocation6], 4294967280 }
  0xa8   :  { %504 = vsyncpa [#allocation5], 1 }
  0xa9   :  { %505 = vsyncpa [#allocation6], 1 }

</bundles_post_ra>
